<compile_context>
chip_gen: v6e
topology: v6e:2x2x1
jax: 0.10.0
libtpu: 0.0.40
codegen_flags: <defaults>
</compile_context>

<pallas_src>
import jax
import jax.numpy as jnp
from jax.experimental import pallas as pl
from jax.experimental.pallas import tpu as pltpu

H1 = 32           # input_layer out / hidden_{a,b} in
H2 = 16           # hidden_{a,b} out / loop dim / output_{1,2} in
LOOP_ITERS = 3
LANE = 128        # TPU lane width


# --------------------------------------------------------------------------
# Kernel (feature-major: activations are (features, tb))
# --------------------------------------------------------------------------
def _make_kernel(input_dim, out_total):
    def kernel(x_ref, w_ref, b_ref, out_ref):
        cdt = w_ref.dtype                       # matmul input dtype (f32 or bf16)
        x = x_ref[...]                          # (input_dim, tb)

        # h = relu(W0^T @ x + b0)                                  -> (32, tb)
        w0 = w_ref[0, :H1, :input_dim]
        b0 = b_ref[0, :H1, :]
        h = jnp.maximum(
            jnp.dot(w0, x, preferred_element_type=jnp.float32) + b0, 0.0)

        # fused hidden_a | hidden_b: ab rows 0:16 = a, rows 16:32 = b
        w_ab = w_ref[1, :2 * H2, :H1]
        b_ab = b_ref[1, :2 * H2, :]
        ab = jnp.maximum(
            jnp.dot(w_ab, h.astype(cdt), preferred_element_type=jnp.float32)
            + b_ab, 0.0)                                          # (32, tb)

        # 3x residual loop on the a half via block weight [[Wl^T,0],[0,0]];
        # zero bias on the b half means relu(0)=0 keeps b untouched.
        w_loop = w_ref[2, :2 * H2, :2 * H2]
        b_loop = jnp.broadcast_to(b_ref[2, :2 * H2, :], ab.shape)  # hoisted
        for _ in range(LOOP_ITERS):                                # unrolled
            la = jnp.dot(w_loop, ab.astype(cdt),
                         preferred_element_type=jnp.float32) + b_loop
            ab = ab + jnp.maximum(la, 0.0)

        # head: [W1^T|W1^T ; W2^T|W2^T] @ ab == W_out^T @ (a + b)
        w_out = w_ref[3, :out_total, :2 * H2]
        b_out = b_ref[3, :out_total, :]
        out_ref[...] = (
            jnp.dot(w_out, ab.astype(cdt), preferred_element_type=jnp.float32)
            + b_out)                                               # (out_total, tb)

    return kernel


# --------------------------------------------------------------------------
# Parameters
# --------------------------------------------------------------------------
def init_params(key, input_dim, output1_dim=3, output2_dim=1, dtype=jnp.float32):
    """Deterministic init; weights stored [in, out] (x @ W layout), bias (1, out)."""
    dims = [
        ("input_layer", input_dim, H1),
        ("hidden_a", H1, H2),
        ("hidden_b", H1, H2),
        ("loop", H2, H2),
        ("output1", H2, output1_dim),
        ("output2", H2, output2_dim),
    ]
    params = {}
    for name, fan_in, fan_out in dims:
        key, kw, kb = jax.random.split(key, 3)
        bound = 1.0 / float(fan_in) ** 0.5
        params[name + "_w"] = jax.random.uniform(
            kw, (fan_in, fan_out), dtype, minval=-bound, maxval=bound)
        params[name + "_b"] = jax.random.uniform(
            kb, (1, fan_out), dtype, minval=-bound, maxval=bound)
    return params


def pack_params(params, input_dim, output1_dim=3, output2_dim=1):
    """Pack 6 (transposed) weights -> one (4, 32, k_max) slab, 6 biases ->
    one (4, 32, 1) slab. Parameter-only: call ONCE per parameter set."""
    out_total = output1_dim + output2_dim
    assert out_total <= H1, "head width must fit the 32-wide slab"
    assert 2 * H2 <= H1, "hidden_a|hidden_b fusion assumes 2*H2 <= H1"
    k_max = max(input_dim, H1)

    w_slab = jnp.zeros((4, H1, k_max), jnp.float32)
    w_slab = w_slab.at[0, :H1, :input_dim].set(params["input_layer_w"].T)
    w_ab_t = jnp.concatenate(
        [params["hidden_a_w"].T, params["hidden_b_w"].T], axis=0)   # (32, 32)
    w_slab = w_slab.at[1, :2 * H2, :H1].set(w_ab_t)
    # block loop weight: rows 0:16 = [W_loop^T, 0]; rows 16:32 = 0
    w_slab = w_slab.at[2, :H2, :H2].set(params["loop_w"].T)
    w_out_t = jnp.concatenate(
        [params["output1_w"].T, params["output2_w"].T], axis=0)     # (out_total, 16)
    w_out_blk = jnp.concatenate([w_out_t, w_out_t], axis=1)         # (out_total, 32)
    w_slab = w_slab.at[3, :out_total, :2 * H2].set(w_out_blk)

    b_slab = jnp.zeros((4, H1, 1), jnp.float32)
    b_slab = b_slab.at[0, :H1, 0].set(params["input_layer_b"][0])
    b_slab = b_slab.at[1, :2 * H2, 0].set(
        jnp.concatenate([params["hidden_a_b"][0], params["hidden_b_b"][0]]))
    b_slab = b_slab.at[2, :H2, 0].set(params["loop_b"][0])  # b-half bias stays 0
    b_slab = b_slab.at[3, :out_total, 0].set(
        jnp.concatenate([params["output1_b"][0], params["output2_b"][0]]))
    return w_slab, b_slab


# --------------------------------------------------------------------------
# Wrapper
# --------------------------------------------------------------------------
def _pick_tile(batch, block_batch):
    """Lane-aligned batch tile, >=2 grid tiles whenever the batch allows it."""
    lane_batch = ((batch + LANE - 1) // LANE) * LANE
    if lane_batch <= LANE:
        tb = LANE
    else:
        half = ((lane_batch // 2 + LANE - 1) // LANE) * LANE   # aim for >=2 tiles
        tb = max(LANE, min(block_batch, half))
        tb = (tb // LANE) * LANE
    padded = ((batch + tb - 1) // tb) * tb
    return tb, padded


def my_neuron_system(x, packed, output1_dim=3, output2_dim=1,
                     block_batch=4096, use_bf16=False):
    """x: (batch, input_dim) f32. packed: (w_slab, b_slab) from pack_params."""
    w_slab, b_slab = packed
    batch, input_dim = x.shape
    out_total = output1_dim + output2_dim
    tb, padded_batch = _pick_tile(batch, block_batch)

    # feature-major input: (input_dim, padded_batch), batch on the lane axis
    x_t = x.T
    if padded_batch != batch:
        x_t = jnp.pad(x_t, ((0, 0), (0, padded_batch - batch)))

    if use_bf16:
        x_t = x_t.astype(jnp.bfloat16)
        w_slab = w_slab.astype(jnp.bfloat16)

    grid = (padded_batch // tb,)

    flops = 2 * padded_batch * (
        input_dim * H1 + H1 * (2 * H2)
        + LOOP_ITERS * (2 * H2) * (2 * H2) + (2 * H2) * out_total)
    bytes_accessed = (
        x_t.size * x_t.dtype.itemsize
        + padded_batch * out_total * 4
        + w_slab.size * w_slab.dtype.itemsize
        + b_slab.size * b_slab.dtype.itemsize)

    fused = pl.pallas_call(
        _make_kernel(input_dim, out_total),
        out_shape=jax.ShapeDtypeStruct((out_total, padded_batch), jnp.float32),
        grid=grid,
        in_specs=[
            pl.BlockSpec((input_dim, tb), lambda i: (0, i)),    # activations: tiled
            pl.BlockSpec(w_slab.shape, lambda i: (0, 0, 0)),    # weight slab: resident
            pl.BlockSpec(b_slab.shape, lambda i: (0, 0, 0)),    # bias slab: resident
        ],
        out_specs=pl.BlockSpec((out_total, tb), lambda i: (0, i)),  # lane-dense store
        compiler_params=pltpu.CompilerParams(
            dimension_semantics=("parallel",)),                 # v7x: 2 TCs share tiles
        cost_estimate=pl.CostEstimate(
            flops=int(flops), transcendentals=0,
            bytes_accessed=int(bytes_accessed)),
    )(x_t, w_slab, b_slab)

    out1 = fused[:output1_dim, :batch].T
    out2 = fused[output1_dim:, :batch].T
    return out1, out2


# --------------------------------------------------------------------------
# Pure-JAX reference mirroring the PyTorch module
# --------------------------------------------------------------------------
def _reference_forward(x, params):
    h = jax.nn.relu(x @ params["input_layer_w"] + params["input_layer_b"])
    a = jax.nn.relu(h @ params["hidden_a_w"] + params["hidden_a_b"])
    b = jax.nn.relu(h @ params["hidden_b_w"] + params["hidden_b_b"])
    for _ in range(LOOP_ITERS):
        a = a + jax.nn.relu(a @ params["loop_w"] + params["loop_b"])
    combined = a + b
    out1 = combined @ params["output1_w"] + params["output1_b"]
    out2 = combined @ params["output2_w"] + params["output2_b"]
    return out1, out2


if __name__ == "__main__":
    input_dim = 16
    key = jax.random.PRNGKey(0)
    k_params, k_x, k_x2 = jax.random.split(key, 3)

    params = init_params(k_params, input_dim)
    packed = pack_params(params, input_dim, 3, 1)   # packed once, amortized

    # Small, single-tile case (batch padded to one 128-lane tile).
    batch = 8
    x = jax.random.normal(k_x, (batch, input_dim), dtype=jnp.float32)
    out1, out2 = my_neuron_system(x, packed)
    out1, out2 = jax.block_until_ready((out1, out2))
    ref1, ref2 = _reference_forward(x, params)
    assert out1.shape == (batch, 3) and out2.shape == (batch, 1)
    assert jnp.allclose(out1, ref1, atol=1e-5, rtol=1e-5)
    assert jnp.allclose(out2, ref2, atol=1e-5, rtol=1e-5)

    # Multi-tile (gridded) case with batch padding: >=2 tiles for v7x megacore.
    batch2 = 300
    x2 = jax.random.normal(k_x2, (batch2, input_dim), dtype=jnp.float32)
    o1, o2 = my_neuron_system(x2, packed, block_batch=256)
    o1, o2 = jax.block_until_ready((o1, o2))
    r1, r2 = _reference_forward(x2, params)
    assert o1.shape == (batch2, 3) and o2.shape == (batch2, 1)
    assert jnp.allclose(o1, r1, atol=1e-5, rtol=1e-5)
    assert jnp.allclose(o2, r2, atol=1e-5, rtol=1e-5)

    # Opt-in bf16 matmul path (numerics-changing; loose tolerance on purpose).
    b1, b2 = my_neuron_system(x2, packed, block_batch=256, use_bf16=True)
    b1, b2 = jax.block_until_ready((b1, b2))
    assert b1.shape == (batch2, 3) and b2.shape == (batch2, 1)
    assert jnp.allclose(b1, r1, atol=0.2, rtol=0.05)
    assert jnp.allclose(b2, r2, atol=0.2, rtol=0.05)

    print("KERNEL_OK")
</pallas_src>

<mosaic_0001>
module attributes {stable_mosaic.version = 11 : i64} {
  func.func @kernel(%arg0: i32, %arg1: memref<16x128xf32, #tpu.memory_space<vmem>>, %arg2: memref<4x32x32xf32, #tpu.memory_space<vmem>>, %arg3: memref<4x32x1xf32, #tpu.memory_space<vmem>>, %arg4: memref<4x128xf32, #tpu.memory_space<vmem>>) attributes {dimension_semantics = [#tpu.dimension_semantics<parallel>], iteration_bounds = array<i64: 1>, scalar_prefetch = 0 : i64, scratch_operands = 0 : i64, tpu.core_type = #tpu.core_type<tc>, window_params = [{transform_indices = @transform_0, window_bounds = array<i64: 16, 128>}, {pipeline_mode = #tpu.pipeline_mode<synchronous>, transform_indices = @transform_1, window_bounds = array<i64: 4, 32, 32>}, {pipeline_mode = #tpu.pipeline_mode<synchronous>, transform_indices = @transform_2, window_bounds = array<i64: 4, 32, 1>}, {transform_indices = @transform_3, window_bounds = array<i64: 4, 128>}]} {
    %c0 = arith.constant 0 : index
    %c0_0 = arith.constant 0 : index
    %0 = vector.load %arg1[%c0, %c0_0] : memref<16x128xf32, #tpu.memory_space<vmem>>, vector<16x128xf32>
    %c0_1 = arith.constant 0 : index
    %c0_2 = arith.constant 0 : index
    %c0_3 = arith.constant 0 : index
    %1 = vector.load %arg2[%c0_1, %c0_2, %c0_3] : memref<4x32x32xf32, #tpu.memory_space<vmem>>, vector<1x32x16xf32>
    %2 = vector.shape_cast %1 : vector<1x32x16xf32> to vector<32x16xf32>
    %c0_4 = arith.constant 0 : index
    %c0_5 = arith.constant 0 : index
    %c0_6 = arith.constant 0 : index
    %3 = vector.load %arg3[%c0_4, %c0_5, %c0_6] : memref<4x32x1xf32, #tpu.memory_space<vmem>>, vector<1x32x1xf32>
    %4 = vector.shape_cast %3 : vector<1x32x1xf32> to vector<32x1xf32>
    %cst = arith.constant dense<0.000000e+00> : vector<32x128xf32>
    %5 = tpu.matmul %2, %0, %cst {dimension_numbers = #tpu.dot_dimension_numbers<[1], [0], [0], [1], [0, 0, 1, 1], [], []>} : vector<32x16xf32>, vector<16x128xf32>, vector<32x128xf32> -> vector<32x128xf32>
    %6 = vector.broadcast %4 : vector<32x1xf32> to vector<32x128xf32>
    %7 = arith.addf %5, %6 : vector<32x128xf32>
    %cst_7 = arith.constant 0.000000e+00 : f32
    %8 = vector.broadcast %cst_7 : f32 to vector<32x128xf32>
    %9 = arith.maximumf %7, %8 : vector<32x128xf32>
    %c1 = arith.constant 1 : index
    %c0_8 = arith.constant 0 : index
    %c0_9 = arith.constant 0 : index
    %10 = vector.load %arg2[%c1, %c0_8, %c0_9] : memref<4x32x32xf32, #tpu.memory_space<vmem>>, vector<1x32x32xf32>
    %11 = vector.shape_cast %10 : vector<1x32x32xf32> to vector<32x32xf32>
    %c1_10 = arith.constant 1 : index
    %c0_11 = arith.constant 0 : index
    %c0_12 = arith.constant 0 : index
    %12 = vector.load %arg3[%c1_10, %c0_11, %c0_12] : memref<4x32x1xf32, #tpu.memory_space<vmem>>, vector<1x32x1xf32>
    %13 = vector.shape_cast %12 : vector<1x32x1xf32> to vector<32x1xf32>
    %cst_13 = arith.constant dense<0.000000e+00> : vector<32x128xf32>
    %14 = tpu.matmul %11, %9, %cst_13 {dimension_numbers = #tpu.dot_dimension_numbers<[1], [0], [0], [1], [0, 0, 1, 1], [], []>} : vector<32x32xf32>, vector<32x128xf32>, vector<32x128xf32> -> vector<32x128xf32>
    %15 = vector.broadcast %13 : vector<32x1xf32> to vector<32x128xf32>
    %16 = arith.addf %14, %15 : vector<32x128xf32>
    %cst_14 = arith.constant 0.000000e+00 : f32
    %17 = vector.broadcast %cst_14 : f32 to vector<32x128xf32>
    %18 = arith.maximumf %16, %17 : vector<32x128xf32>
    %c2 = arith.constant 2 : index
    %c0_15 = arith.constant 0 : index
    %c0_16 = arith.constant 0 : index
    %19 = vector.load %arg2[%c2, %c0_15, %c0_16] : memref<4x32x32xf32, #tpu.memory_space<vmem>>, vector<1x32x32xf32>
    %20 = vector.shape_cast %19 : vector<1x32x32xf32> to vector<32x32xf32>
    %c2_17 = arith.constant 2 : index
    %c0_18 = arith.constant 0 : index
    %c0_19 = arith.constant 0 : index
    %21 = vector.load %arg3[%c2_17, %c0_18, %c0_19] : memref<4x32x1xf32, #tpu.memory_space<vmem>>, vector<1x32x1xf32>
    %22 = vector.shape_cast %21 : vector<1x32x1xf32> to vector<32x1xf32>
    %23 = vector.shape_cast %22 : vector<32x1xf32> to vector<32x1xf32>
    %24 = vector.broadcast %23 : vector<32x1xf32> to vector<32x128xf32>
    %cst_20 = arith.constant dense<0.000000e+00> : vector<32x128xf32>
    %25 = tpu.matmul %20, %18, %cst_20 {dimension_numbers = #tpu.dot_dimension_numbers<[1], [0], [0], [1], [0, 0, 1, 1], [], []>} : vector<32x32xf32>, vector<32x128xf32>, vector<32x128xf32> -> vector<32x128xf32>
    %26 = arith.addf %25, %24 : vector<32x128xf32>
    %cst_21 = arith.constant 0.000000e+00 : f32
    %27 = vector.broadcast %cst_21 : f32 to vector<32x128xf32>
    %28 = arith.maximumf %26, %27 : vector<32x128xf32>
    %29 = arith.addf %18, %28 : vector<32x128xf32>
    %cst_22 = arith.constant dense<0.000000e+00> : vector<32x128xf32>
    %30 = tpu.matmul %20, %29, %cst_22 {dimension_numbers = #tpu.dot_dimension_numbers<[1], [0], [0], [1], [0, 0, 1, 1], [], []>} : vector<32x32xf32>, vector<32x128xf32>, vector<32x128xf32> -> vector<32x128xf32>
    %31 = arith.addf %30, %24 : vector<32x128xf32>
    %cst_23 = arith.constant 0.000000e+00 : f32
    %32 = vector.broadcast %cst_23 : f32 to vector<32x128xf32>
    %33 = arith.maximumf %31, %32 : vector<32x128xf32>
    %34 = arith.addf %29, %33 : vector<32x128xf32>
    %cst_24 = arith.constant dense<0.000000e+00> : vector<32x128xf32>
    %35 = tpu.matmul %20, %34, %cst_24 {dimension_numbers = #tpu.dot_dimension_numbers<[1], [0], [0], [1], [0, 0, 1, 1], [], []>} : vector<32x32xf32>, vector<32x128xf32>, vector<32x128xf32> -> vector<32x128xf32>
    %36 = arith.addf %35, %24 : vector<32x128xf32>
    %cst_25 = arith.constant 0.000000e+00 : f32
    %37 = vector.broadcast %cst_25 : f32 to vector<32x128xf32>
    %38 = arith.maximumf %36, %37 : vector<32x128xf32>
    %39 = arith.addf %34, %38 : vector<32x128xf32>
    %c3 = arith.constant 3 : index
    %c0_26 = arith.constant 0 : index
    %c0_27 = arith.constant 0 : index
    %40 = vector.load %arg2[%c3, %c0_26, %c0_27] : memref<4x32x32xf32, #tpu.memory_space<vmem>>, vector<1x4x32xf32>
    %41 = vector.shape_cast %40 : vector<1x4x32xf32> to vector<4x32xf32>
    %c3_28 = arith.constant 3 : index
    %c0_29 = arith.constant 0 : index
    %c0_30 = arith.constant 0 : index
    %42 = vector.load %arg3[%c3_28, %c0_29, %c0_30] : memref<4x32x1xf32, #tpu.memory_space<vmem>>, vector<1x4x1xf32>
    %43 = vector.shape_cast %42 : vector<1x4x1xf32> to vector<4x1xf32>
    %cst_31 = arith.constant dense<0.000000e+00> : vector<4x128xf32>
    %44 = tpu.matmul %41, %39, %cst_31 {dimension_numbers = #tpu.dot_dimension_numbers<[1], [0], [0], [1], [0, 0, 1, 1], [], []>} : vector<4x32xf32>, vector<32x128xf32>, vector<4x128xf32> -> vector<4x128xf32>
    %45 = vector.broadcast %43 : vector<4x1xf32> to vector<4x128xf32>
    %46 = arith.addf %44, %45 : vector<4x128xf32>
    %c0_32 = arith.constant 0 : index
    %c0_33 = arith.constant 0 : index
    %47 = vector.load %arg4[%c0_32, %c0_33] : memref<4x128xf32, #tpu.memory_space<vmem>>, vector<4x128xf32>
    tpu.vector_store %arg4[%c0_32, %c0_33], %46 {strides = array<i32>} : memref<4x128xf32, #tpu.memory_space<vmem>>, vector<4x128xf32>,
    return
  }
  func.func @transform_0(%arg0: i32) -> (i32, i32) {
    %c0_i32 = arith.constant 0 : i32
    %c0_i32_0 = arith.constant 0 : i32
    return %c0_i32, %arg0 : i32, i32
  }
  func.func @transform_1(%arg0: i32) -> (i32, i32, i32) {
    %c0_i32 = arith.constant 0 : i32
    %c0_i32_0 = arith.constant 0 : i32
    %c0_i32_1 = arith.constant 0 : i32
    %c0_i32_2 = arith.constant 0 : i32
    return %c0_i32, %c0_i32_0, %c0_i32_1 : i32, i32, i32
  }
  func.func @transform_2(%arg0: i32) -> (i32, i32, i32) {
    %c0_i32 = arith.constant 0 : i32
    %c0_i32_0 = arith.constant 0 : i32
    %c0_i32_1 = arith.constant 0 : i32
    %c0_i32_2 = arith.constant 0 : i32
    return %c0_i32, %c0_i32_0, %c0_i32_1 : i32, i32, i32
  }
  func.func @transform_3(%arg0: i32) -> (i32, i32) {
    %c0_i32 = arith.constant 0 : i32
    %c0_i32_0 = arith.constant 0 : i32
    return %c0_i32, %arg0 : i32, i32
  }
}

</mosaic_0001>

<bundles_post_ra>
// kernel: tpu_custom_call.1
= control target key start
LH: loop header
LB: loop body
LE: loop exit
PB: predicated region body
PF: predicated region fallthrough
CT: control target
= control target key end

     0   :  { %8 = vsyncpa [#allocation3], 0  ;;  %s1076_s0 = inlined_call_operand.hbm [shape: f32[16,128], index: 0, kind: input, shape index: {}]   ;;  %s1077_s1 = inlined_call_operand.vmem [shape: f32[4,32,32], index: 1, kind: input, shape index: {}]   ;;  %s1078_s2 = inlined_call_operand.vmem [shape: f32[4,32,1], index: 2, kind: input, shape index: {}]   ;;  %s1079_s3 = inlined_call_operand.hbm [shape: f32[4,128], index: 3, kind: output, shape index: {}]  }
   0x1   :  { %9 = vsyncpa [#allocation4], 0  ;;  %s924_s12 = smov [#allocation2]  }
   0x2   :  { %s15_s13 = sshll.u32 %s924_s12, 4  ;;  %s16_s13 = int_to_ptr.vmem [resolvable:$true] %s15_s13 }
   0x3   :  { %s888_s14 = scalar_lea.vmem %s16_s13, 256  ;;  %p893_p1 = scmp.lt.s32.totalorder %s16_s13, %s16_s13 }
   0x4   :  { %p889_p0 = scmp.ne.s32.totalorder %s16_s13, %s888_s14  ;;  %p894_p2 = scmp.lt.s32.totalorder %s888_s14, %s888_s14 }
   0x6   :  { %p895_p3 = por %p894_p2, %p893_p1 }
   0x8   :  { %p896_p4 = pnand %p895_p3, %p889_p0 }
   0xa   :  { %899 = shalt.err (!%p896_p4)
}
   0xb   :  { %s925_s15 = smov 128   ;;  %s926_s16 = smov 8  }
   0xc   :  { %21 = dma.hbm_to_vmem [thread:$0]  %s1076_s0, 256, %s16_s13, [#allocation3], %s925_s15, %s925_s15, %s926_s16  }
   0xd   :  { %920 = dma.done.wait [#allocation3], 256  }
   0xe   :  { %921 = vsyncadd [#allocation3], 4294967040  ;;  %v927_v0 = vmov 0   ;;  %vm59_vm0 = vcmask 130048   ;;  %v30_v1 = vld [vmem:[#allocation2 + $0x8] sm:$0xff]  ;;  %v29_v2 = vld [vmem:[#allocation2] sm:$0xff] }
   0xf   :  { %878 = vset.pattern.permute.xlu0 %v927_v0  ;;  %879 = vset.pattern.permute.xlu1 %v927_v0  ;;  %v31_v3 = vld [vmem:[%s1077_s1] sm:$0xff]  ;;  %v32_v4 = vld [vmem:[%s1077_s1 + $0x8] sm:$0xff]  ;;  %v38_v5 = vld [vmem:[%s1078_s2 + $0x18] sm:$0xff]  ;;  %vm191_vm1 = vcmask 261120   ;;  %vm929_vm2 = vmmov 0   ;;  %s930_s14 = smov [#allocation5]  }
  0x10   :  { %794 = vmatprep.subr.mxu0 %v30_v1  ;;  %798 = vmatprep.mubr.msk.f32.mxu0 %vm59_vm0, %v31_v3  ;;  %v33_v6 = vld [vmem:[%s1077_s1 + $0x10] sm:$0xff]  ;;  %v36_v7 = vld [vmem:[%s1078_s2 + $0x8] sm:$0xff]  ;;  %v35_v9 = vld [vmem:[%s1078_s2] sm:$0xff]  ;;  %s703_s15 = sshll.u32 %s930_s14, 4  ;;  %s704_s15 = int_to_ptr.vmem [resolvable:$true] %s703_s15 }
  0x11   :  { %795 = vmatpush3.msra.mxu0 %v30_v1  ;;  %56 = vperm.xlu0 %878, %v38_v5   ;;  %v37_v8 = vld [vmem:[%s1078_s2 + $0x10] sm:$0xff]  ;;  %v34_v10 = vld [vmem:[%s1077_s1 + $0x18] sm:$0xff]  ;;  %v721_v13 = vld [vmem:[%s1078_s2 + $0x28] sm:$0xff]  ;;  %s900_s16 = scalar_lea.vmem %s704_s15, 64  ;;  %p905_p6 = scmp.lt.s32.totalorder %s704_s15, %s704_s15 }
  0x12   :  { %796 = vmatprep.subr.mxu0 %v29_v2  ;;  %46 = vperm.xlu1 %879, %v36_v7   ;;  %v723_v11 = vld [vmem:[%s1078_s2 + $0x38] sm:$0xff]  ;;  %v722_v12 = vld [vmem:[%s1078_s2 + $0x30] sm:$0xff]  ;;  %v720_v14 = vld [vmem:[%s1078_s2 + $0x20] sm:$0xff]  ;;  %p901_p5 = scmp.ne.s32.totalorder %s704_s15, %s900_s16  ;;  %p906_p7 = scmp.lt.s32.totalorder %s900_s16, %s900_s16 }
  0x13   :  { %797 = vmatpush3.msra.mxu0 %v29_v2  ;;  %v735_v15 = vld [vmem:[%s1078_s2 + $0x58] sm:$0xff]  ;;  %v734_v16 = vld [vmem:[%s1078_s2 + $0x50] sm:$0xff]  ;;  %v733_v17 = vld [vmem:[%s1078_s2 + $0x48] sm:$0xff] }
  0x14   :  { %799 = vmatmul.mubr.msk.f32.vlgmr.msra.gmra.mxu0 %vm59_vm0, %v32_v4  ;;  %v732_v18 = vld [vmem:[%s1078_s2 + $0x40] sm:$0xff]  ;;  %v717_v37 = vld [vmem:[%s1077_s1 + $0x28] sm:$0xff]  ;;  %v718_v38 = vld [vmem:[%s1077_s1 + $0x30] sm:$0xff]  ;;  %p907_p8 = por %p906_p7, %p905_p6 }
  0x15   :  { %801 = vmatprep.mubr.msk.f32.mxu0 %vm59_vm0, %v33_v6  ;;  %51 = vperm.xlu0 %878, %v37_v8   ;;  %v749_v19 = vld [vmem:[%s1078_s2 + $0x60] sm:$0xf]  ;;  %v719_v39 = vld [vmem:[%s1077_s1 + $0x38] sm:$0xff]  ;;  %v1033_v57 = vld [vmem:[%s1077_s1 + $0x48] sm:$0xff] }
  0x16   :  { %41 = vperm.xlu1 %879, %v35_v9   ;;  %v716_v20 = vld [vmem:[%s1077_s1 + $0x20] sm:$0xff]  ;;  %v1038_v58 = vld [vmem:[%s1077_s1 + $0x50] sm:$0xff]  ;;  %v731_v59 = vld [vmem:[%s1077_s1 + $0x58] sm:$0xff]  ;;  %p908_p9 = pnand %p907_p8, %p901_p5 }
  0x17   :  { %812 = vmatprep.mubr.msk.f32.mxu1 %vm191_vm1, %v716_v20  ;;  %v728_v40 = vld [vmem:[%s1077_s1 + $0x40] sm:$0xff] }
  0x18   :  { %802 = vmatmul.mubr.msk.f32.gmra.mxu0 %vm59_vm0, %v34_v10 }
  0x19   :  { %188 = vperm.xlu0 %878, %v723_v11   ;;  %826 = vmatprep.mubr.msk.f32.mxu0 %vm191_vm1, %v728_v40 }
  0x1a   :  { %183 = vperm.xlu1 %879, %v722_v12  }
  0x1d   :  { %178 = vperm.xlu0 %878, %v721_v13  }
  0x1e   :  { %173 = vperm.xlu1 %879, %v720_v14  }
  0x21   :  { %320 = vperm.xlu0 %878, %v735_v15  }
  0x22   :  { %315 = vperm.xlu1 %879, %v734_v16  }
  0x25   :  { %310 = vperm.xlu0 %878, %v733_v17  }
  0x26   :  { %305 = vperm.xlu1 %879, %v732_v18  }
  0x29   :  { %620 = vperm.xlu0 %878, %v749_v19  }
  0x8c   :  { %v57_v21 = vpop.permute.xlu0 %56 }
  0x8d   :  { %v47_v23 = vpop.permute.xlu1 %46 }
  0x90   :  { %v52_v27 = vpop.permute.xlu0 %51 }
  0x91   :  { %v42_v32 = vpop.permute.xlu1 %41 }
  0x94   :  { %v189_v41 = vpop.permute.xlu0 %188 }
  0x95   :  { %v184_v43 = vpop.permute.xlu1 %183 }
  0x98   :  { %v179_v47 = vpop.permute.xlu0 %178 }
  0x99   :  { %v174_v52 = vpop.permute.xlu1 %173 }
  0x9c   :  { %v1049_v60 = vpop.permute.xlu0 %320 }
  0x9d   :  { %v1051_v61 = vpop.permute.xlu1 %315 }
  0xa0   :  { %v311_v0 = vpop.permute.xlu0 %310 }
  0xa1   :  { %v306_v4 = vpop.permute.xlu1 %305 }
  0xd4   :  { %v800_v22 = vpop.f32.mrf.mxu0 }
  0xd5   :  { %v144_v29 = vadd.f32 %v800_v22, %v47_v23 }
  0xd6   :  { %v138_v24 = vpop.f32.mrf.mxu0 }
  0xd7   :  { %v139_v33 = vadd.f32 %v138_v24, %v42_v32  ;;  %v158_v35 = vmax.f32 %v144_v29, 0.0  ;;  %v928_v32 = vmov 0.0  }
  0xd8   :  { %v803_v25 = vpop.f32.mrf.mxu0 }
  0xd9   :  { %v154_v26 = vadd.f32 %v803_v25, %v57_v21  ;;  %v157_v36 = vmax.f32 %v139_v33, 0.0 }
  0xda   :  { %v148_v28 = vpop.f32.mrf.mxu0 }
  0xdb   :  { %v160_v30 = vmax.f32 %v154_v26, 0.0  ;;  %v149_v31 = vadd.f32 %v148_v28, %v52_v27 }
  0xdd   :  { %v159_v34 = vmax.f32 %v149_v31, 0.0  ;;  %804 = vmatprep.subr.mxu1 %v160_v30 }
  0xde   :  { %805 = vmatpush3.msra.mxu1 %v160_v30 }
  0xdf   :  { %806 = vmatprep.subr.mxu1 %v159_v34 }
  0xe0   :  { %807 = vmatpush3.msra.mxu1 %v159_v34 }
  0xe1   :  { %808 = vmatprep.subr.mxu1 %v158_v35 }
  0xe2   :  { %809 = vmatpush3.msra.mxu1 %v158_v35 }
  0xe3   :  { %810 = vmatprep.subr.mxu1 %v157_v36 }
  0xe4   :  { %811 = vmatpush3.msra.mxu1 %v157_v36 }
  0xe5   :  { %813 = vmatmul.mubr.msk.f32.vlgmr.msra.gmra.mxu1 %vm191_vm1, %v717_v37 }
  0xe6   :  { %815 = vmatprep.mubr.msk.f32.mxu1 %vm191_vm1, %v718_v38 }
  0xe9   :  { %816 = vmatmul.mubr.msk.f32.gmra.mxu1 %vm191_vm1, %v719_v39 }
  0xea   :  { %840 = vmatprep.mubr.msk.f32.mxu1 %vm191_vm1, %v728_v40 }
 0x1a5   :  { %v814_v42 = vpop.f32.mrf.mxu1 }
 0x1a6   :  { %v276_v49 = vadd.f32 %v814_v42, %v179_v47 }
 0x1a7   :  { %v270_v44 = vpop.f32.mrf.mxu1 }
 0x1a8   :  { %v271_v53 = vadd.f32 %v270_v44, %v174_v52  ;;  %v290_v55 = vmax.f32 %v276_v49, 0.0  ;;  %v748_v49 = vld [vmem:[%s1077_s1 + $0x60] sm:$0xf] }
 0x1a9   :  { %v817_v45 = vpop.f32.mrf.mxu1 }
 0x1aa   :  { %v286_v46 = vadd.f32 %v817_v45, %v189_v41  ;;  %v289_v56 = vmax.f32 %v271_v53, 0.0 }
 0x1ab   :  { %v280_v48 = vpop.f32.mrf.mxu1 }
 0x1ac   :  { %v292_v50 = vmax.f32 %v286_v46, 0.0  ;;  %v281_v51 = vadd.f32 %v280_v48, %v184_v43 }
 0x1ae   :  { %v291_v54 = vmax.f32 %v281_v51, 0.0  ;;  %818 = vmatprep.subr.mxu0 %v292_v50 }
 0x1af   :  { %819 = vmatpush3.msra.mxu0 %v292_v50 }
 0x1b0   :  { %820 = vmatprep.subr.mxu0 %v291_v54 }
 0x1b1   :  { %821 = vmatpush3.msra.mxu0 %v291_v54 }
 0x1b2   :  { %822 = vmatprep.subr.mxu0 %v290_v55 }
 0x1b3   :  { %823 = vmatpush3.msra.mxu0 %v290_v55 }
 0x1b4   :  { %824 = vmatprep.subr.mxu0 %v289_v56 }
 0x1b5   :  { %825 = vmatpush3.msra.mxu0 %v289_v56 }
 0x1b6   :  { %827 = vmatmul.mubr.msk.f32.vlgmr.msra.gmra.mxu0 %vm191_vm1, %v1033_v57 }
 0x1b7   :  { %829 = vmatprep.mubr.msk.f32.mxu0 %vm191_vm1, %v1038_v58 }
 0x1ba   :  { %830 = vmatmul.mubr.msk.f32.gmra.mxu0 %vm191_vm1, %v731_v59 }
 0x1bb   :  { %854 = vmatprep.mubr.msk.f32.mxu0 %vm191_vm1, %v728_v40 }
 0x276   :  { %v828_v62 = vpop.f32.mrf.mxu0 }
 0x277   :  { %v407_v2 = vadd.f32 %v828_v62, %v311_v0 }
 0x278   :  { %v401_v63 = vpop.f32.mrf.mxu0 }
 0x279   :  { %v402_v6 = vadd.f32 %v401_v63, %v306_v4  ;;  %v421_v9 = vmax.f32 %v407_v2, 0.0 }
 0x27a   :  { %v831_v1 = vpop.f32.mrf.mxu0 }
 0x27b   :  { %v417_v3 = vadd.f32 %v831_v1, %v1049_v60  ;;  %v420_v12 = vmax.f32 %v402_v6, 0.0  ;;  %v425_v14 = vadd.f32 %v421_v9, %v290_v55 }
 0x27c   :  { %v411_v5 = vpop.f32.mrf.mxu0 }
 0x27d   :  { %v423_v7 = vmax.f32 %v417_v3, 0.0  ;;  %v412_v8 = vadd.f32 %v411_v5, %v1051_v61  ;;  %v424_v15 = vadd.f32 %v420_v12, %v289_v56 }
 0x27f   :  { %v427_v10 = vadd.f32 %v423_v7, %v292_v50  ;;  %v422_v11 = vmax.f32 %v412_v8, 0.0  ;;  %v621_v50 = vpop.permute.xlu0 %620 }
 0x281   :  { %v426_v13 = vadd.f32 %v422_v11, %v291_v54  ;;  %832 = vmatprep.subr.mxu1 %v427_v10 }
 0x282   :  { %833 = vmatpush3.msra.mxu1 %v427_v10 }
 0x283   :  { %834 = vmatprep.subr.mxu1 %v426_v13 }
 0x284   :  { %835 = vmatpush3.msra.mxu1 %v426_v13 }
 0x285   :  { %836 = vmatprep.subr.mxu1 %v425_v14 }
 0x286   :  { %837 = vmatpush3.msra.mxu1 %v425_v14 }
 0x287   :  { %838 = vmatprep.subr.mxu1 %v424_v15 }
 0x288   :  { %839 = vmatpush3.msra.mxu1 %v424_v15 }
 0x289   :  { %841 = vmatmul.mubr.msk.f32.vlgmr.msra.gmra.mxu1 %vm191_vm1, %v1033_v57  ;;  %860 = vmatprep.subr.mxu1 %v928_v32 }
 0x28a   :  { %843 = vmatprep.mubr.msk.f32.mxu1 %vm191_vm1, %v1038_v58 }
 0x28d   :  { %844 = vmatmul.mubr.msk.f32.gmra.mxu1 %vm191_vm1, %v731_v59 }
 0x28e   :  { %868 = vmatprep.mubr.msk.f32.mxu1 %vm929_vm2, %v928_v32 }
 0x349   :  { %v842_v16 = vpop.f32.mrf.mxu1 }
 0x34a   :  { %v500_v19 = vadd.f32 %v842_v16, %v311_v0 }
 0x34b   :  { %v494_v17 = vpop.f32.mrf.mxu1 }
 0x34c   :  { %v495_v22 = vadd.f32 %v494_v17, %v306_v4  ;;  %v514_v25 = vmax.f32 %v500_v19, 0.0 }
 0x34d   :  { %v845_v18 = vpop.f32.mrf.mxu1 }
 0x34e   :  { %v510_v20 = vadd.f32 %v845_v18, %v1049_v60  ;;  %v513_v28 = vmax.f32 %v495_v22, 0.0  ;;  %v518_v30 = vadd.f32 %v514_v25, %v425_v14 }
 0x34f   :  { %v504_v21 = vpop.f32.mrf.mxu1 }
 0x350   :  { %v516_v23 = vmax.f32 %v510_v20, 0.0  ;;  %v505_v24 = vadd.f32 %v504_v21, %v1051_v61  ;;  %v517_v31 = vadd.f32 %v513_v28, %v424_v15 }
 0x352   :  { %v520_v26 = vadd.f32 %v516_v23, %v427_v10  ;;  %v515_v27 = vmax.f32 %v505_v24, 0.0 }
 0x354   :  { %v519_v29 = vadd.f32 %v515_v27, %v426_v13  ;;  %846 = vmatprep.subr.mxu0 %v520_v26 }
 0x355   :  { %847 = vmatpush3.msra.mxu0 %v520_v26 }
 0x356   :  { %848 = vmatprep.subr.mxu0 %v519_v29 }
 0x357   :  { %849 = vmatpush3.msra.mxu0 %v519_v29 }
 0x358   :  { %850 = vmatprep.subr.mxu0 %v518_v30 }
 0x359   :  { %851 = vmatpush3.msra.mxu0 %v518_v30 }
 0x35a   :  { %852 = vmatprep.subr.mxu0 %v517_v31 }
 0x35b   :  { %853 = vmatpush3.msra.mxu0 %v517_v31 }
 0x35c   :  { %855 = vmatmul.mubr.msk.f32.vlgmr.msra.gmra.mxu0 %vm191_vm1, %v1033_v57 }
 0x35d   :  { %857 = vmatprep.mubr.msk.f32.mxu0 %vm191_vm1, %v1038_v58 }
 0x360   :  { %858 = vmatmul.mubr.msk.f32.gmra.mxu0 %vm191_vm1, %v731_v59 }
 0x41c   :  { %v856_v33 = vpop.f32.mrf.mxu0 }
 0x41d   :  { %v593_v36 = vadd.f32 %v856_v33, %v311_v0 }
 0x41e   :  { %v587_v34 = vpop.f32.mrf.mxu0 }
 0x41f   :  { %v588_v39 = vadd.f32 %v587_v34, %v306_v4  ;;  %v607_v42 = vmax.f32 %v593_v36, 0.0 }
 0x420   :  { %v859_v35 = vpop.f32.mrf.mxu0 }
 0x421   :  { %v603_v37 = vadd.f32 %v859_v35, %v1049_v60  ;;  %v606_v45 = vmax.f32 %v588_v39, 0.0  ;;  %v611_v47 = vadd.f32 %v607_v42, %v518_v30 }
 0x422   :  { %v597_v38 = vpop.f32.mrf.mxu0 }
 0x423   :  { %v609_v40 = vmax.f32 %v603_v37, 0.0  ;;  %v598_v41 = vadd.f32 %v597_v38, %v1051_v61  ;;  %v610_v48 = vadd.f32 %v606_v45, %v517_v31 }
 0x425   :  { %v613_v43 = vadd.f32 %v609_v40, %v520_v26  ;;  %v608_v44 = vmax.f32 %v598_v41, 0.0 }
 0x427   :  { %v612_v46 = vadd.f32 %v608_v44, %v519_v29  ;;  %861 = vmatpush3.msra.mxu1 %v613_v43 }
 0x428   :  { %862 = vmatprep.subr.mxu1 %v928_v32 }
 0x429   :  { %863 = vmatpush3.msra.mxu1 %v612_v46 }
 0x42a   :  { %864 = vmatprep.subr.mxu1 %v928_v32 }
 0x42b   :  { %865 = vmatpush3.msra.mxu1 %v611_v47 }
 0x42c   :  { %866 = vmatprep.subr.mxu1 %v928_v32 }
 0x42d   :  { %867 = vmatpush3.msra.mxu1 %v610_v48 }
 0x42e   :  { %869 = vmatmul.mubr.msk.f32.vlgmr.msra.gmra.mxu1 %vm191_vm1, %v748_v49 }
 0x4ee   :  { %v692_v51 = vpop.f32.mrf.mxu1 }
 0x4ef   :  { %v693_v52 = vadd.f32 %v692_v51, %v621_v50 }
 0x4f0   :  { %v870_v53 = vpop.f32.mrf.mxu1 }
 0x4f1   :  { %696 = vst [vmem:[#allocation5] sm:$0xf] %v693_v52 }
 0x4f2   :  { %911 = shalt.err (!%p908_p9)
}
 0x4f3   :  { %706 = dma.vmem_to_hbm [thread:$0]  %s704_s15, 64, %s1079_s3, [#allocation4]  }
 0x4f4   :  { %922 = dma.done.wait [#allocation4], 64  }
 0x4f5   :  { %923 = vsyncadd [#allocation4], 4294967232 }
 0x4f6   :  { %710 = vsyncpa [#allocation3], 1 }
 0x4f7   :  { %711 = vsyncpa [#allocation4], 1 }

</bundles_post_ra>
